<compile_context>
chip_gen: v6e
topology: v6e:2x2x1
jax: 0.10.0
libtpu: 0.0.40
codegen_flags: <defaults>
</compile_context>

<pallas_src>
import jax
import jax.numpy as jnp
from jax.experimental import pallas as pl
from jax.experimental.pallas import tpu as pltpu

_LANES = 128
_SUBLANES = 8
_MIN_CHUNK_BYTES = 1 << 20   # >= 1 MiB per concurrent DMA stream
_MAX_DMA_CHUNKS = 8          # 4-8 DMAs in flight is plenty to saturate HBM


# ----------------------------------------------------------------------------
# Kernels (pure DMA: no compute, no VMEM staging)
# ----------------------------------------------------------------------------
def _single_copy_kernel(x_hbm, o_hbm, sems):
    """Whole-ref HBM->HBM DMA (any rank, any shape)."""
    cp = pltpu.make_async_copy(x_hbm, o_hbm, sems.at[0])
    cp.start()
    cp.wait()


def _make_chunked_copy_kernel(bounds):
    """HBM->HBM copy of a [rows, 128] slab split into len(bounds) DMA streams."""
    def kernel(x_hbm, o_hbm, sems):
        copies = [
            pltpu.make_async_copy(
                x_hbm.at[pl.ds(lo, sz), :],
                o_hbm.at[pl.ds(lo, sz), :],
                sems.at[c],
            )
            for c, (lo, sz) in enumerate(bounds)
        ]
        for cp in copies:          # launch all streams first ...
            cp.start()
        for cp in copies:          # ... then drain them
            cp.wait()
    return kernel


# ----------------------------------------------------------------------------
# Host-side helpers
# ----------------------------------------------------------------------------
def _chunk_bounds(rows, itemsize):
    """Split [rows, 128] into <=8 near-equal, tile-aligned, >=1MiB row chunks."""
    pack = max(1, 4 // int(itemsize)) * _SUBLANES      # rows per native HBM tile
    total_bytes = rows * _LANES * int(itemsize)
    n_chunks = int(max(1, min(_MAX_DMA_CHUNKS, total_bytes // _MIN_CHUNK_BYTES)))
    step = -(-rows // n_chunks)                        # ceil division
    step = -(-step // pack) * pack                     # round up to tile rows
    bounds = []
    lo = 0
    while lo < rows:
        sz = min(step, rows - lo)
        bounds.append((lo, sz))
        lo += sz
    return bounds


def _pallas_dma_copy(flat):
    """Copy a flat 1-D array via DMA-engine-only HBM->HBM transfers."""
    n = flat.shape[0]
    if n == 0:
        return flat

    itemsize = int(jnp.dtype(flat.dtype).itemsize)
    cost = pl.CostEstimate(flops=0, transcendentals=0,
                           bytes_accessed=2 * n * itemsize)

    if n % _LANES == 0:
        # Common path: lane-dense [rows, 128] slab, chunked concurrent DMAs.
        rows = n // _LANES
        slab = flat.reshape(rows, _LANES)              # metadata-only reshape
        bounds = _chunk_bounds(rows, itemsize)
        if len(bounds) == 1:
            kernel, n_sems = _single_copy_kernel, 1
        else:
            kernel, n_sems = _make_chunked_copy_kernel(bounds), len(bounds)
        out = pl.pallas_call(
            kernel,
            out_shape=jax.ShapeDtypeStruct((rows, _LANES), slab.dtype),
            in_specs=[pl.BlockSpec(memory_space=pl.ANY)],
            out_specs=pl.BlockSpec(memory_space=pl.ANY),
            scratch_shapes=[pltpu.SemaphoreType.DMA((n_sems,))],
            cost_estimate=cost,
        )(slab)
        return out.reshape(-1)                         # metadata-only reshape

    # Ragged element count (not a multiple of 128 lanes): single whole-ref
    # 1-D DMA -- no pad / post-slice round trips (old path cost ~3x traffic).
    out = pl.pallas_call(
        _single_copy_kernel,
        out_shape=jax.ShapeDtypeStruct((n,), flat.dtype),
        in_specs=[pl.BlockSpec(memory_space=pl.ANY)],
        out_specs=pl.BlockSpec(memory_space=pl.ANY),
        scratch_shapes=[pltpu.SemaphoreType.DMA((1,))],
        cost_estimate=cost,
    )(flat)
    return out


def _resolve_size(size, total):
    """Resolve a PyTorch-style view size (may contain one -1)."""
    size = tuple(int(s) for s in size)
    if size.count(-1) > 1:
        raise ValueError("only one dimension can be inferred (-1)")
    if -1 in size:
        known = 1
        for s in size:
            if s != -1:
                known *= s
        if known == 0 or total % known != 0:
            raise ValueError(f"cannot view tensor of {total} elems as {size}")
        size = tuple(total // known if s == -1 else s for s in size)
    prod = 1
    for s in size:
        prod *= s
    if prod != total:
        raise ValueError(f"view size {size} incompatible with {total} elems")
    return size


class View:
    """JAX/Pallas equivalent of the PyTorch `View` module (no parameters).

    copy=True  -> data flows through the HBM->HBM DMA kernel (fresh buffer).
    copy=False -> true torch.view semantics: storage-aliasing metadata reshape
                  (zero bytes of HBM traffic; no kernel).
    """

    def __init__(self, size, copy=True):
        self.size = tuple(size)
        self.copy = copy

    def __call__(self, tensor):
        total = tensor.size
        out_size = _resolve_size(self.size, total)
        if not self.copy:
            return tensor.reshape(out_size)            # zero-copy mode
        # Row-major flatten == torch contiguous buffer reinterpretation.
        flat = tensor.reshape(-1)
        return _pallas_dma_copy(flat).reshape(out_size)


if __name__ == "__main__":
    key = jax.random.PRNGKey(0)

    # Typical VAE usage: flatten conv features before the dense latent head.
    x = jax.random.normal(key, (2, 4, 16, 16), dtype=jnp.float32)   # NCHW
    y = jax.block_until_ready(View((2, -1))(x))
    ref = x.reshape(2, -1)
    assert y.shape == (2, 1024), y.shape
    assert y.dtype == x.dtype
    assert bool(jnp.array_equal(y, ref))

    # Ragged element count (960, not a multiple of 128 lanes): whole-ref DMA.
    x2 = jax.random.normal(key, (3, 5, 8, 8), dtype=jnp.float32)
    y2 = jax.block_until_ready(View((3, -1))(x2))
    assert y2.shape == (3, 320), y2.shape
    assert bool(jnp.array_equal(y2, x2.reshape(3, -1)))

    # Larger aligned case (2 MiB) exercising multiple concurrent DMA chunks.
    x3 = jax.random.normal(key, (8, 64, 64, 16), dtype=jnp.float32)
    y3 = jax.block_until_ready(View((8, -1))(x3))
    assert y3.shape == (8, 64 * 64 * 16), y3.shape
    assert bool(jnp.array_equal(y3, x3.reshape(8, -1)))

    # Zero-copy (true torch.view aliasing semantics) sanity check.
    y4 = jax.block_until_ready(View((-1,), copy=False)(x))
    assert bool(jnp.array_equal(y4, x.reshape(-1)))

    print("KERNEL_OK")
</pallas_src>

<mosaic_0001>
module attributes {stable_mosaic.version = 11 : i64} {
  func.func @_single_copy_kernel(%arg0: memref<16x128xf32, #tpu.memory_space<any>>, %arg1: memref<16x128xf32, #tpu.memory_space<any>>, %arg2: memref<1x!tpu.dma_semaphore, #tpu.memory_space<semaphore_mem>>) attributes {dimension_semantics = [], scalar_prefetch = 0 : i64, scratch_operands = 1 : i64, tpu.core_type = #tpu.core_type<tc>} {
    %c0_i32 = arith.constant 0 : i32
    %0 = tpu.memref_slice %arg2[%c0_i32] : memref<1x!tpu.dma_semaphore, #tpu.memory_space<semaphore_mem>> -> memref<1x!tpu.dma_semaphore, #tpu.memory_space<semaphore_mem>>
    %1 = tpu.memref_squeeze %0 : memref<1x!tpu.dma_semaphore, #tpu.memory_space<semaphore_mem>> -> memref<!tpu.dma_semaphore, #tpu.memory_space<semaphore_mem>>
    tpu.enqueue_dma source(%arg0 : memref<16x128xf32, #tpu.memory_space<any>>) target(%arg1 : memref<16x128xf32, #tpu.memory_space<any>>) target_semaphore(%1 : memref<!tpu.dma_semaphore, #tpu.memory_space<semaphore_mem>>)
    %c0_i32_0 = arith.constant 0 : i32
    %2 = tpu.memref_slice %arg2[%c0_i32_0] : memref<1x!tpu.dma_semaphore, #tpu.memory_space<semaphore_mem>> -> memref<1x!tpu.dma_semaphore, #tpu.memory_space<semaphore_mem>>
    %3 = tpu.memref_squeeze %2 : memref<1x!tpu.dma_semaphore, #tpu.memory_space<semaphore_mem>> -> memref<!tpu.dma_semaphore, #tpu.memory_space<semaphore_mem>>
    tpu.wait_dma2 semaphore(%3 : memref<!tpu.dma_semaphore, #tpu.memory_space<semaphore_mem>>) src(%arg0 : memref<16x128xf32, #tpu.memory_space<any>>) dst(%arg1 : memref<16x128xf32, #tpu.memory_space<any>>)
    return
  }
}

</mosaic_0001>

<bundles_post_ra>
// kernel: tpu_custom_call.1
= control target key start
LH: loop header
LB: loop body
LE: loop exit
PB: predicated region body
PF: predicated region fallthrough
CT: control target
= control target key end

     0   :  { %s28_s6 = smov [#allocation2]   ;;  %s29_s7 = smov 131072   ;;  %s47_s0 = inlined_call_operand.hbm [shape: f32[16,128], index: 0, kind: input, shape index: {}]   ;;  %s48_s1 = inlined_call_operand.hbm [shape: f32[16,128], index: 1, kind: output, shape index: {}]  }
   0x1   :  { %s30_s8 = smov 0  }
   0x2   :  { %12 = dma.general %s47_s0, 256, %s48_s1, %s28_s6, %s29_s7, [#allocation4], %s30_s8, 0  }
   0x3   :  { %26 = dma.done.wait [#allocation2], 256 }
   0x4   :  { %27 = vsyncadd [#allocation2], 4294967040 }
   0x5   :  { %16 = vsyncmov [#allocation2] }
   0x8   :  { %s17_s13 = vpop.sfrf %16 }
   0x9   :  { %p22_p0 = scmp.ne.s32.totalorder %s17_s13, 0 }
   0xb   :  { %21 = shalt.err (%p22_p0)  }

</bundles_post_ra>
